<compile_context>
chip_gen: v6e
topology: v6e:2x2x1
jax: 0.10.0
libtpu: 0.0.40
codegen_flags: <defaults>
</compile_context>

<pallas_src>
import jax
import jax.numpy as jnp
import numpy as np
from jax.experimental import pallas as pl
from jax.experimental.pallas import tpu as pltpu

_IN_EPS = 1e-5      # nn.InstanceNorm2d default eps (biased variance)
_SIG_EPS = 1e-7     # explicit eps used for img_sig (unbiased variance, torch.var default)


def adain_kernel(x_ref, ab_ref, y_ref, stats_ref):
    # x_ref:     (1, tc, HW)   lane-dense spatial axis
    # ab_ref:    (1, 2, tc)    [alpha ; beta] for this channel tile
    # y_ref:     (1, tc, HW)
    # stats_ref: (1, 2, tc)    [sig ; mean] for this channel tile
    x = x_ref[...].astype(jnp.float32)                     # (1, tc, HW)
    n = x.shape[-1]                                        # static H*W (assumed > 1)

    mean = jnp.mean(x, axis=-1, keepdims=True)             # (1, tc, 1)
    diff = x - mean
    ssq = jnp.sum(diff * diff, axis=-1, keepdims=True)     # (1, tc, 1)

    sig = jnp.sqrt(ssq * (1.0 / (n - 1)) + _SIG_EPS)       # torch.var (unbiased)
    inv_std = jax.lax.rsqrt(ssq * (1.0 / n) + _IN_EPS)     # InstanceNorm2d (biased)

    ab = ab_ref[...].astype(jnp.float32)                   # (1, 2, tc)
    alpha = ab[:, 0, :][..., None]                         # (1, tc, 1)
    beta = ab[:, 1, :][..., None]                          # (1, tc, 1)

    y_ref[...] = (alpha * (diff * inv_std) + beta).astype(y_ref.dtype)
    stats_ref[...] = jnp.stack([sig[:, :, 0], mean[:, :, 0]], axis=1)  # (1, 2, tc)


def _pick_channel_tile(C, HW, itemsize, budget_bytes=4 << 20):
    """Largest channel tile whose f32 working block fits `budget_bytes`.

    Prefers the whole channel axis (no tiling). When tiling is needed, picks
    the largest divisor of C that fits, preferring (8, 128)-friendly sizes.
    """
    per_chan = HW * max(itemsize, 4)          # f32 working copy dominates VMEM
    if C * per_chan <= budget_bytes or C == 1:
        return C
    divisors = [d for d in range(1, C) if C % d == 0 and d * per_chan <= budget_bytes]
    if not divisors:
        return 1
    for align in (128, 8, 1):
        aligned = [d for d in divisors if d % align == 0]
        if aligned:
            return max(aligned)
    return max(divisors)


def adain_forward(x, alpha, beta):
    """x: (B, C, H, W); alpha, beta: (B, C) float32.

    Returns (out, cat(sig, mean), cat(alpha, beta)) matching the PyTorch module:
      out   : (B, C, H, W)
      stats : (2B, C, 1, 1)   -- [img_sig ; img_mean]
      params: (2B, C, 1, 1)   -- [alpha ; beta]
    """
    B, C, H, W = x.shape
    HW = H * W
    assert HW > 1, "AdaIN requires H*W > 1 (unbiased variance divides by H*W - 1)."

    tc = _pick_channel_tile(C, HW, jnp.dtype(x.dtype).itemsize)
    n_ct = C // tc
    grid = (B, n_ct)

    x3 = x.reshape(B, C, HW)                                   # lane-dense layout
    ab = jnp.stack([alpha, beta], axis=1).astype(jnp.float32)  # (B, 2, C)

    y3, stats = pl.pallas_call(
        adain_kernel,
        out_shape=(
            jax.ShapeDtypeStruct((B, C, HW), x.dtype),
            jax.ShapeDtypeStruct((B, 2, C), jnp.float32),
        ),
        grid_spec=pltpu.PrefetchScalarGridSpec(
            num_scalar_prefetch=0,
            grid=grid,
            in_specs=[
                pl.BlockSpec((1, tc, HW), lambda b, c: (b, c, 0)),
                pl.BlockSpec((1, 2, tc), lambda b, c: (b, 0, c)),
            ],
            out_specs=[
                pl.BlockSpec((1, tc, HW), lambda b, c: (b, c, 0)),
                pl.BlockSpec((1, 2, tc), lambda b, c: (b, 0, c)),
            ],
        ),
        compiler_params=pltpu.CompilerParams(
            # Per-channel stats are independent -> both axes parallel (megacore
            # sharding on v7x; no-op on single-TC v5e/v6e).
            dimension_semantics=("parallel", "parallel"),
            # Blocks are capped at ~4 MiB f32; 32 MiB covers double-buffered
            # in/out plus in-kernel f32 temporaries on every generation
            # (v7x physical VMEM is only 64 MiB).
            vmem_limit_bytes=32 * 1024 * 1024,
        ),
    )(x3, ab)

    y = y3.reshape(B, C, H, W)
    sig = stats[:, 0, :]                                       # (B, C)
    mean = stats[:, 1, :]                                      # (B, C)
    stats_out = jnp.concatenate([sig, mean], axis=0).reshape(2 * B, C, 1, 1)
    params = jnp.concatenate([alpha, beta], axis=0).astype(jnp.float32)
    params = params.reshape(2 * B, C, 1, 1)
    return y, stats_out, params


def adain_reference(x, alpha, beta):
    B, C, H, W = x.shape
    n = H * W
    mean = jnp.mean(x, axis=(2, 3), keepdims=True)
    diff = x - mean
    ssq = jnp.sum(diff * diff, axis=(2, 3), keepdims=True)
    sig = jnp.sqrt(ssq / (n - 1) + _SIG_EPS)
    norm = diff * jax.lax.rsqrt(ssq / n + _IN_EPS)
    a4 = alpha.reshape(B, C, 1, 1)
    b4 = beta.reshape(B, C, 1, 1)
    return (a4 * norm + b4,
            jnp.concatenate([sig, mean], axis=0),
            jnp.concatenate([a4, b4], axis=0))


if __name__ == "__main__":
    # args.bs_mult = 2 (batch), args.medium_ch = 4 (channels), spatial = 16x16
    B, C, H, W = 2, 4, 16, 16
    key = jax.random.PRNGKey(0)
    kx, ka, kb = jax.random.split(key, 3)

    x = jax.random.normal(kx, (B, C, H, W), dtype=jnp.float32)
    # Parameters: shape (bs_mult, medium_ch), initialized ~ N(0, 1) deterministically.
    alpha = jax.random.normal(ka, (B, C), dtype=jnp.float32)
    beta = jax.random.normal(kb, (B, C), dtype=jnp.float32)

    out, stats, params = adain_forward(x, alpha, beta)
    jax.block_until_ready((out, stats, params))

    ref_out, ref_stats, ref_params = adain_reference(x, alpha, beta)
    np.testing.assert_allclose(np.asarray(out), np.asarray(ref_out), rtol=1e-5, atol=1e-5)
    np.testing.assert_allclose(np.asarray(stats), np.asarray(ref_stats), rtol=1e-5, atol=1e-5)
    np.testing.assert_allclose(np.asarray(params), np.asarray(ref_params), rtol=1e-6, atol=1e-6)

    print("KERNEL_OK")
</pallas_src>

<mosaic_0001>
module attributes {stable_mosaic.version = 11 : i64} {
  func.func @adain_kernel(%arg0: i32, %arg1: i32, %arg2: memref<1x4x256xf32, #tpu.memory_space<vmem>>, %arg3: memref<1x2x4xf32, #tpu.memory_space<vmem>>, %arg4: memref<1x4x256xf32, #tpu.memory_space<vmem>>, %arg5: memref<1x2x4xf32, #tpu.memory_space<vmem>>) attributes {dimension_semantics = [#tpu.dimension_semantics<parallel>, #tpu.dimension_semantics<parallel>], iteration_bounds = array<i64: 2, 1>, scalar_prefetch = 0 : i64, scratch_operands = 0 : i64, tpu.core_type = #tpu.core_type<tc>, window_params = [{transform_indices = @transform_0, window_bounds = array<i64: 1, 4, 256>}, {transform_indices = @transform_1, window_bounds = array<i64: 1, 2, 4>}, {transform_indices = @transform_2, window_bounds = array<i64: 1, 4, 256>}, {transform_indices = @transform_3, window_bounds = array<i64: 1, 2, 4>}]} {
    %c0 = arith.constant 0 : index
    %c0_0 = arith.constant 0 : index
    %c0_1 = arith.constant 0 : index
    %0 = vector.load %arg2[%c0, %c0_0, %c0_1] : memref<1x4x256xf32, #tpu.memory_space<vmem>>, vector<1x4x256xf32>
    %cst = arith.constant dense<0.000000e+00> : vector<1x4xf32>
    %1 = vector.multi_reduction <add>, %0, %cst [2] : vector<1x4x256xf32> to vector<1x4xf32>
    %2 = vector.shape_cast %1 : vector<1x4xf32> to vector<1x4x1xf32>
    %cst_2 = arith.constant 2.560000e+02 : f32
    %3 = vector.broadcast %cst_2 : f32 to vector<1x4x1xf32>
    %4 = arith.divf %2, %3 : vector<1x4x1xf32>
    %5 = vector.broadcast %4 : vector<1x4x1xf32> to vector<1x4x256xf32>
    %6 = arith.subf %0, %5 : vector<1x4x256xf32>
    %7 = arith.mulf %6, %6 : vector<1x4x256xf32>
    %cst_3 = arith.constant dense<0.000000e+00> : vector<1x4xf32>
    %8 = vector.multi_reduction <add>, %7, %cst_3 [2] : vector<1x4x256xf32> to vector<1x4xf32>
    %9 = vector.shape_cast %8 : vector<1x4xf32> to vector<1x4x1xf32>
    %cst_4 = arith.constant 0.00392156886 : f32
    %10 = vector.broadcast %cst_4 : f32 to vector<1x4x1xf32>
    %11 = arith.mulf %9, %10 : vector<1x4x1xf32>
    %cst_5 = arith.constant 1.000000e-07 : f32
    %12 = vector.broadcast %cst_5 : f32 to vector<1x4x1xf32>
    %13 = arith.addf %11, %12 : vector<1x4x1xf32>
    %14 = math.sqrt %13 : vector<1x4x1xf32>
    %cst_6 = arith.constant 3.906250e-03 : f32
    %15 = vector.broadcast %cst_6 : f32 to vector<1x4x1xf32>
    %16 = arith.mulf %9, %15 : vector<1x4x1xf32>
    %cst_7 = arith.constant 9.99999974E-6 : f32
    %17 = vector.broadcast %cst_7 : f32 to vector<1x4x1xf32>
    %18 = arith.addf %16, %17 : vector<1x4x1xf32>
    %19 = math.rsqrt %18 : vector<1x4x1xf32>
    %c0_8 = arith.constant 0 : index
    %c0_9 = arith.constant 0 : index
    %c0_10 = arith.constant 0 : index
    %20 = vector.load %arg3[%c0_8, %c0_9, %c0_10] : memref<1x2x4xf32, #tpu.memory_space<vmem>>, vector<1x2x4xf32>
    %21 = vector.extract_strided_slice %20 {offsets = [0, 0, 0], sizes = [1, 1, 4], strides = [1, 1, 1]} : vector<1x2x4xf32> to vector<1x1x4xf32>
    %22 = vector.shape_cast %21 : vector<1x1x4xf32> to vector<1x4xf32>
    %23 = vector.shape_cast %22 : vector<1x4xf32> to vector<1x4x1xf32>
    %24 = vector.extract_strided_slice %20 {offsets = [0, 1, 0], sizes = [1, 1, 4], strides = [1, 1, 1]} : vector<1x2x4xf32> to vector<1x1x4xf32>
    %25 = vector.shape_cast %24 : vector<1x1x4xf32> to vector<1x4xf32>
    %26 = vector.shape_cast %25 : vector<1x4xf32> to vector<1x4x1xf32>
    %27 = vector.broadcast %19 : vector<1x4x1xf32> to vector<1x4x256xf32>
    %28 = arith.mulf %6, %27 : vector<1x4x256xf32>
    %29 = vector.broadcast %23 : vector<1x4x1xf32> to vector<1x4x256xf32>
    %30 = arith.mulf %29, %28 : vector<1x4x256xf32>
    %31 = vector.broadcast %26 : vector<1x4x1xf32> to vector<1x4x256xf32>
    %32 = arith.addf %30, %31 : vector<1x4x256xf32>
    %c0_11 = arith.constant 0 : index
    %c0_12 = arith.constant 0 : index
    %c0_13 = arith.constant 0 : index
    %33 = vector.load %arg4[%c0_11, %c0_12, %c0_13] : memref<1x4x256xf32, #tpu.memory_space<vmem>>, vector<1x4x256xf32>
    tpu.vector_store %arg4[%c0_11, %c0_12, %c0_13], %32 {strides = array<i32>} : memref<1x4x256xf32, #tpu.memory_space<vmem>>, vector<1x4x256xf32>,
    %34 = vector.shape_cast %14 : vector<1x4x1xf32> to vector<1x4xf32>
    %35 = vector.shape_cast %4 : vector<1x4x1xf32> to vector<1x4xf32>
    %36 = vector.shape_cast %34 : vector<1x4xf32> to vector<1x1x4xf32>
    %37 = vector.shape_cast %35 : vector<1x4xf32> to vector<1x1x4xf32>
    %38 = tpu.concatenate %36, %37 in 1 : vector<1x1x4xf32>, vector<1x1x4xf32> -> vector<1x2x4xf32>
    %c0_14 = arith.constant 0 : index
    %c0_15 = arith.constant 0 : index
    %c0_16 = arith.constant 0 : index
    %39 = vector.load %arg5[%c0_14, %c0_15, %c0_16] : memref<1x2x4xf32, #tpu.memory_space<vmem>>, vector<1x2x4xf32>
    tpu.vector_store %arg5[%c0_14, %c0_15, %c0_16], %38 {strides = array<i32>} : memref<1x2x4xf32, #tpu.memory_space<vmem>>, vector<1x2x4xf32>,
    return
  }
  func.func @transform_0(%arg0: i32, %arg1: i32) -> (i32, i32, i32) {
    %c0_i32 = arith.constant 0 : i32
    %c0_i32_0 = arith.constant 0 : i32
    return %arg0, %arg1, %c0_i32 : i32, i32, i32
  }
  func.func @transform_1(%arg0: i32, %arg1: i32) -> (i32, i32, i32) {
    %c0_i32 = arith.constant 0 : i32
    %c0_i32_0 = arith.constant 0 : i32
    return %arg0, %c0_i32, %arg1 : i32, i32, i32
  }
  func.func @transform_2(%arg0: i32, %arg1: i32) -> (i32, i32, i32) {
    %c0_i32 = arith.constant 0 : i32
    %c0_i32_0 = arith.constant 0 : i32
    return %arg0, %arg1, %c0_i32 : i32, i32, i32
  }
  func.func @transform_3(%arg0: i32, %arg1: i32) -> (i32, i32, i32) {
    %c0_i32 = arith.constant 0 : i32
    %c0_i32_0 = arith.constant 0 : i32
    return %arg0, %c0_i32, %arg1 : i32, i32, i32
  }
}

</mosaic_0001>

<bundles_post_ra>
// kernel: tpu_custom_call.1
= control target key start
LH: loop header
LB: loop body
LE: loop exit
PB: predicated region body
PF: predicated region fallthrough
CT: control target
= control target key end

     0   :  { %9 = vsyncpa [#allocation3], 0  ;;  %s1043_s0 = inlined_call_operand.hbm [shape: f32[2,4,256], index: 0, kind: input, shape index: {}]   ;;  %s1044_s1 = inlined_call_operand.hbm [shape: f32[2,2,4], index: 1, kind: input, shape index: {}]   ;;  %s1045_s2 = inlined_call_operand.hbm [shape: f32[2,4,256], index: 2, kind: output, shape index: {0}]   ;;  %s1046_s3 = inlined_call_operand.hbm [shape: f32[2,2,4], index: 3, kind: output, shape index: {1}]  }
   0x1   :  { %11 = vsyncpa [#allocation3 + $0x1], 0 }
   0x2   :  { %12 = vsyncpa [#allocation6], 0 }
   0x3   :  { %14 = vsyncpa [#allocation6 + $0x1], 0 }
   0x4   :  { %15 = vsyncpa [#allocation4], 0 }
   0x5   :  { %17 = vsyncpa [#allocation4 + $0x1], 0 }
   0x6   :  { %18 = vsyncpa [#allocation9], 0 }
   0x7   :  { %20 = vsyncpa [#allocation9 + $0x1], 0  ;;  %s830_s12 = smov 0   ;;  %s832_s13 = smov 0  }
   0x8   :  { %s834_s14 = smov 0   ;;  %s836_s15 = smov 0  }
   0x9   :  { %s838_s16 = smov 0   ;;  %s840_s17 = smov 0  }
   0xa LB: > { %s532_s18 = sadd.s32 4294967295, %s803_s17   ;;  %s533_s19 = sadd.s32 4294967294, %s803_s17   ;;  %s803_s17 = sphi %s840_s17, %s26_s17   ;;  %s799_s16 = sphi %s838_s16, %s1058_s16   ;;  %s795_s15 = sphi %s836_s15, %s1057_s15   ;;  %s791_s14 = sphi %s834_s14, %s1056_s14   ;;  %s787_s13 = sphi %s832_s13, %s1055_s13   ;;  %s783_s12 = sphi %s830_s12, %s1054_s12  }
   0xb   : > { %s38_s20 = sadd.s32 1, %s799_s16  ;;  %s47_s21 = sadd.s32 1, %s791_s14 }
   0xc   : > { %p40_p0 = scmp.ge.s32.totalorder %s38_s20, 2  ;;  %p54_p1 = scmp.ne.s32.totalorder %s791_s14, %s787_s13 }
   0xd   : > { %p55_p2 = scmp.eq.s32.totalorder %s803_s17, 0  ;;  %p60_p3 = scmp.ne.s32.totalorder %s787_s13, %s783_s12 }
   0xe   : > { %s1060_s20 = smov (%p40_p0, %s38_s20), 0  ;;  %p61_p5 = scmp.eq.s32.totalorder %s532_s18, 0 }
   0xf   : > { %p871_p4 = por %p55_p2, %p54_p1  ;;  %s42_s23 = ssub.s32 %s799_s16, %s1060_s20 }
  0x10   : > { %p114_p6 = scmp.eq.s32.totalorder %s532_s18, 1  ;;  %p45_p7 = scmp.eq.s32.totalorder %s42_s23, 0 }
  0x11   : > { %p877_p8 = por %p61_p5, %p60_p3  ;;  %p120_p10 = scmp.eq.s32.totalorder %s533_s19, 1 }
  0x12   : > { %p881_p9 = por %p114_p6, %p54_p1  ;;  %p577_p13 = scmp.lt.s32.totalorder %s803_s17, 2 }
  0x13   : > { %s886_s26 = scalar_select %p45_p7, %s791_s14, %s47_s21  }
  0x14   : > { %p888_p11 = por %p120_p10, %p60_p3  ;;  %s895_s28 = sand.u32 1, %s791_s14  }
  0x15   : > { %s536_s29 = sshll.u32 %s895_s28, 3  ;;  %s553_s30 = sshll.u32 %s799_s16, 7 }
  0x16   : > { %s180_s6 = scalar_lea.hbm %s1043_s0, %s553_s30  ;;  %s172_s7 = scalar_lea.vmem [#allocation2], %s536_s29 }
  0x17   : > { %s182_s8 = sshll.u32 %s172_s7, 4  ;;  %p904_p0 = pnand %p577_p13, %p871_p4  ;;  %s183_s8 = int_to_ptr.vmem [resolvable:$true] %s182_s8 }
  0x18   : > { %p541_p1 = scmp.ge.s32.totalorder %s803_s17, 1  ;;  %p206_p2 = scmp.lt.s32.totalorder %s803_s17, 3 }
  0x19   : > { %s169_s10 = scalar_lea.sflag [#allocation3], %s895_s28  ;;  %p635_p3 = pneg %p904_p0 }
  0x1a   : > { %s646_s11 = scalar_lea.vmem %s183_s8, 128  ;;  %s805_s18 = smov [#allocation2]  }
  0x1b   : > { %p647_p5 = scmp.ne.s32.totalorder %s183_s8, %s646_s11  ;;  %s651_s19 = sshll.u32 %s805_s18, 4  ;;  %s652_s19 = int_to_ptr.vmem [resolvable:$false] %s651_s19 }
  0x1c   : > { %s653_s21 = scalar_lea.vmem %s652_s19, 256  ;;  %p654_p4 = scmp.lt.s32.totalorder %s183_s8, %s652_s19 }
  0x1d   : > { %p649_p6 = pnand %p647_p5, %p635_p3  ;;  %p655_p10 = scmp.lt.s32.totalorder %s653_s21, %s646_s11 }
  0x1f   : > { %p650_p7 = pneg %p649_p6  ;;  %p656_p13 = por %p655_p10, %p654_p4 }
  0x21   : > { %p657_p12 = pnand %p656_p13, %p650_p7 }
  0x23   : > { %660 = shalt.err (!%p657_p12)
}
  0x24   : > { %566 = dma.hbm_to_vmem [thread:$0]  (!%p904_p0), %s180_s6, 128, %s183_s8, %s169_s10  }
  0x25   : > { %p922_p5 = pnand %p541_p1, %p206_p2  ;;  %s539_s23 = sshll.u32 %s895_s28, 1 }
  0x26   : > { %s540_s29 = sshll.u32 %s799_s16, 5  ;;  %s193_s7 = scalar_lea.vmem [#allocation5], %s539_s23 }
  0x27   : > { %s199_s5 = scalar_lea.hbm %s1044_s1, %s540_s29  ;;  %s201_s11 = sshll.u32 %s193_s7, 4  ;;  %s202_s11 = int_to_ptr.vmem [resolvable:$true] %s201_s11 }
  0x28   : > { %s190_s18 = scalar_lea.sflag [#allocation6], %s895_s28  ;;  %s674_s19 = scalar_lea.vmem %s202_s11, 32 }
  0x29   : > { %p675_p12 = scmp.ne.s32.totalorder %s202_s11, %s674_s19  ;;  %s806_s6 = smov [#allocation5]  }
  0x2a   : > { %s679_s8 = sshll.u32 %s806_s6, 4  ;;  %s680_s8 = int_to_ptr.vmem [resolvable:$false] %s679_s8 }
  0x2b   : > { %p677_p6 = pnand %p675_p12, %p635_p3  ;;  %s681_s10 = scalar_lea.vmem %s680_s8, 64 }
  0x2c   : > { %p682_p1 = scmp.lt.s32.totalorder %s202_s11, %s680_s8  ;;  %p683_p2 = scmp.lt.s32.totalorder %s681_s10, %s674_s19 }
  0x2d   : > { %p678_p7 = pneg %p677_p6 }
  0x2e   : > { %p684_p4 = por %p683_p2, %p682_p1 }
  0x30   : > { %p685_p10 = pnand %p684_p4, %p678_p7 }
  0x32   : > { %688 = shalt.err (!%p685_p10)
}
  0x33   : > { %569 = dma.hbm_to_vmem [thread:$0]  (!%p904_p0), %s199_s5, 32, %s202_s11, %s190_s18  }
  0x34   : > { %210 = sbr.rel (%p922_p5) target bundleno = 416 (0x1a0), region = 28  ;;  %s940_s28 = sand.u32 (!%p922_p5), 1, %s787_s13  }
  0x35   : > { %s542_s21 = sshll.u32 (!%p922_p5), %s940_s28, 3  ;;  %s213_s23 = scalar_lea.sflag (!%p922_p5), [#allocation3], %s940_s28 }
  0x36   : > { %s216_s29 = scalar_lea.vmem (!%p922_p5), [#allocation2], %s542_s21 }
  0x39   : > { %766 = dma.done.wait (%p877_p8), %s213_s23, 128  }
  0x3a   : > { %768 = vsyncadd (%p877_p8), %s213_s23, 4294967168  ;;  %s543_s9 = sshll.u32 %s940_s28, 1  ;;  %s222_s22 = scalar_lea.sflag [#allocation6], %s940_s28 }
  0x3b   : > { %s225_s30 = scalar_lea.vmem [#allocation5], %s543_s9 }
  0x3c   : > { %770 = dma.done.wait (%p877_p8), %s222_s22, 32  }
  0x3d   : > { %772 = vsyncadd (%p877_p8), %s222_s22, 4294967264  ;;  %v274_v0 = vlaneseq  ;;  %vm262_vm0 = vcmask 1043456   ;;  %v258_v4 = vld [vmem:[%s216_s29] sm:$0xff]  ;;  %v301_v9 = vld [vmem:[%s225_s30] sm:$0x3]  ;;  %s550_s24 = sshll.u32 %s795_s15, 5 }
  0x3e   : > { %v260_v5 = vcombine.high %v258_v4, %v258_v4  ;;  %v263_v6 = vsel %vm262_vm0, %v258_v4, 0.0  ;;  %v807_v14 = vmov 839922192   ;;  %s257_s4 = scalar_lea.vmem [#allocation8], %s543_s9  ;;  %vm351_vm3 = vcmask 1040384   ;;  %s968_s18 = scalar_lea.hbm %s1046_s3, %s550_s24 }
  0x3f   : > { %v275_v1 = vshrl.u32 %v274_v0, 7  ;;  %v340_v2 = vand.u32 127, %v274_v0  ;;  %v272_v15 = vunpack.c.l.s4 %v807_v14  ;;  %s391_s5 = sshll.u32 %s257_s4, 4  ;;  %vm353_vm4 = vcmask 25600   ;;  %s554_s19 = sshll.u32 %s795_s15, 7  ;;  %s970_s5 = int_to_ptr.vmem [resolvable:$true] %s391_s5 }
  0x40   : > { %v264_v7 = vsel %vm262_vm0, %v260_v5, 0.0  ;;  %s975_s6 = scalar_lea.vmem [#allocation7], %s542_s21  ;;  %s361_s10 = scalar_lea.sflag [#allocation9], %s940_s28 }
  0x41   : > { %v343_v3 = vsub.s32 %v340_v2, %v275_v1  ;;  %v265_v8 = vadd.f32 %v264_v7, %v263_v6  ;;  %v304_v10 = vsub.s32 0, %v275_v1  ;;  %v311_v11 = vsub.s32 1, %v275_v1  ;;  %s377_s8 = sshll.u32 %s975_s6, 4  ;;  %s689_s23 = scalar_lea.vmem %s970_s5, 32  ;;  %s378_s8 = int_to_ptr.vmem [resolvable:$true] %s377_s8 }
  0x42   : > { %v273_v16 = vunpack.c.0.s8 %v272_v15  ;;  %p690_p8 = scmp.ne.s32.totalorder %s970_s5, %s689_s23  ;;  %s808_s29 = smov [#allocation8]  }
  0x43   : > { %266 = vadd.xlane.f32.xlu0 %v265_v8  ;;  %v305_v12 = vrot.slane %v301_v9, %v304_v10  ;;  %v312_v13 = vrot.slane %v301_v9, %v311_v11  ;;  %s693_s9 = sshll.u32 %s808_s29, 4  ;;  %s694_s9 = int_to_ptr.vmem [resolvable:$false] %s693_s9 }
  0x44   : > { %v276_v17 = vsub.s32 %v273_v16, %v275_v1  ;;  %p691_p0 = pnand %p690_p8, %p881_p9  ;;  %s695_s22 = scalar_lea.vmem %s694_s9, 64 }
  0x45   : > { %307 = vbcast.lane.b32.xlu1 %v305_v12, 256  ;;  %p696_p13 = scmp.lt.s32.totalorder %s970_s5, %s694_s9  ;;  %p697_p5 = scmp.lt.s32.totalorder %s695_s22, %s689_s23 }
  0x46   : > { %p692_p3 = pneg %p691_p0 }
  0x47   : > { %p698_p12 = por %p697_p5, %p696_p13 }
  0x49   : > { %314 = vbcast.lane.b32.xlu1 %v312_v13, 256  ;;  %p699_p6 = pnand %p698_p12, %p692_p3 }
  0xb7   : > { %v308_v36 = vpop.permute.xlu1 %307 }
  0xbb   : > { %v315_v45 = vpop.permute.xlu1 %314 }
  0xcc   : > { %v267_v18 = vpop.xlane.xlu0 %266 }
  0xcd   : > { %v269_v19 = vmul.f32 0.00390625, %v267_v18 }
  0xcf   : > { %v277_v20 = vrot.slane %v269_v19, %v276_v17  ;;  %v349_v21 = vrot.slane %v269_v19, %v343_v3 }
  0xd1   : > { %v279_v22 = vsub.f32 %v258_v4, %v277_v20 }
  0xd3   : > { %v280_v23 = vmul.f32 %v279_v22, %v279_v22 }
  0xd5   : > { %v282_v24 = vcombine.high %v280_v23, %v280_v23  ;;  %v284_v25 = vsel %vm262_vm0, %v280_v23, 0.0 }
  0xd7   : > { %v285_v26 = vsel %vm262_vm0, %v282_v24, 0.0 }
  0xd8   : > { %v286_v27 = vadd.f32 %v285_v26, %v284_v25 }
  0xda   : > { %287 = vadd.xlane.f32.xlu0 %v286_v27 }
 0x163   : > { %v288_v28 = vpop.xlane.xlu0 %287 }
 0x164   : > { %v289_v29 = vmul.f32 0.003921569, %v288_v28  ;;  %v298_v30 = vmul.f32 0.00390625, %v288_v28 }
 0x166   : > { %v290_v31 = vadd.f32 1e-07, %v289_v29  ;;  %v299_v32 = vadd.f32 1e-05, %v298_v30 }
 0x168   : > { %629 = vrsqrt.f32 %v290_v31  ;;  %vm293_vm1 = vcmp.eq.f32.partialorder %v290_v31, inf  ;;  %v296_v37 = vand.u32 2147483648, %v290_v31  ;;  %vm295_vm2 = vcmp.eq.f32.partialorder %v290_v31, 0.0 }
 0x169   : > { %631 = vrsqrt.f32 %v299_v32 }
 0x175   : > { %v630_v33 = vpop.eup %629 }
 0x176   : > { %v632_v34 = vpop.eup %631  ;;  %v292_v35 = vmul.f32 %v630_v33, %v290_v31 }
 0x177   : > { %v323_v38 = vrot.slane %v632_v34, %v276_v17 }
 0x178   : > { %v294_v39 = vsel %vm293_vm1, %v290_v31, %v292_v35 }
 0x179   : > { %v325_v40 = vmul.f32 %v323_v38, %v279_v22  ;;  %v297_v41 = vsel %vm295_vm2, %v296_v37, %v294_v39 }
 0x17a   : > { %v344_v42 = vrot.slane %v297_v41, %v343_v3 }
 0x17b   : > { %v327_v43 = vcombine.high %v325_v40, %v325_v40  ;;  %v329_v44 = vmul.f32 %v325_v40, %v308_v36 }
 0x17c   : > { %v352_v46 = vsel %vm351_vm3, %v344_v42, %v349_v21 }
 0x17d   : > { %v330_v47 = vmul.f32 %v327_v43, %v308_v36  ;;  %354 = vst.msk [vmem:[%s257_s4] sm:$0x3] %vm353_vm4, %v352_v46 }
 0x17e   : > { %702 = shalt.err (!%p699_p6)
}
 0x17f   : > { %s703_s21 = scalar_lea.hbm %s968_s18, 32  ;;  %s707_s4 = scalar_lea.hbm %s1046_s3, 64 }
 0x180   : > { %p704_p7 = scmp.ne.s32.totalorder %s968_s18, %s703_s21  ;;  %p708_p4 = scmp.lt.s32.totalorder %s968_s18, %s1046_s3 }
 0x181   : > { %p709_p10 = scmp.lt.s32.totalorder %s707_s4, %s703_s21 }
 0x182   : > { %p705_p1 = pnand %p704_p7, %p881_p9 }
 0x183   : > { %p710_p8 = por %p709_p10, %p708_p4 }
 0x184   : > { %p706_p2 = pneg %p705_p1 }
 0x186   : > { %p711_p0 = pnand %p710_p8, %p706_p2 }
 0x188   : > { %714 = shalt.err (!%p711_p0)
}
 0x189   : > { %560 = dma.vmem_to_hbm [thread:$0]  (%p881_p9), %s970_s5, 32, %s968_s18, %s361_s10   ;;  %v331_v48 = vadd.f32 %v329_v44, %v315_v45  ;;  %v332_v49 = vadd.f32 %v330_v47, %v315_v45 }
 0x18a   : > { %s375_s9 = scalar_lea.hbm %s1045_s2, %s554_s19  ;;  %s356_s22 = scalar_lea.sflag [#allocation4], %s940_s28 }
 0x18b   : > { %v335_v50 = vcombine.low %v331_v48, %v332_v49  ;;  %s715_s21 = scalar_lea.vmem %s378_s8, 128  ;;  %s809_s30 = smov [#allocation7]  }
 0x18c   : > { %p716_p3 = scmp.ne.s32.totalorder %s378_s8, %s715_s21  ;;  %s719_s24 = sshll.u32 %s809_s30, 4  ;;  %s720_s24 = int_to_ptr.vmem [resolvable:$false] %s719_s24 }
 0x18d   : > { %337 = vst [vmem:[%s975_s6] sm:$0xff] %v335_v50  ;;  %s721_s5 = scalar_lea.vmem %s720_s24, 256  ;;  %p722_p12 = scmp.lt.s32.totalorder %s378_s8, %s720_s24 }
 0x18e   : > { %p717_p13 = pnand %p716_p3, %p881_p9  ;;  %p723_p6 = scmp.lt.s32.totalorder %s721_s5, %s715_s21 }
 0x190   : > { %p718_p5 = pneg %p717_p13  ;;  %p724_p7 = por %p723_p6, %p722_p12 }
 0x192   : > { %p725_p1 = pnand %p724_p7, %p718_p5 }
 0x194   : > { %728 = shalt.err (!%p725_p1)
}
 0x195   : > { %s729_s15 = scalar_lea.hbm %s375_s9, 128  ;;  %s733_s19 = scalar_lea.hbm %s1045_s2, 256 }
 0x196   : > { %p730_p2 = scmp.ne.s32.totalorder %s375_s9, %s729_s15  ;;  %p734_p8 = scmp.lt.s32.totalorder %s375_s9, %s1045_s2 }
 0x197   : > { %p735_p0 = scmp.lt.s32.totalorder %s733_s19, %s729_s15 }
 0x198   : > { %p731_p4 = pnand %p730_p2, %p881_p9 }
 0x199   : > { %p736_p3 = por %p735_p0, %p734_p8 }
 0x19a   : > { %p732_p10 = pneg %p731_p4 }
 0x19c   : > { %p737_p13 = pnand %p736_p3, %p732_p10 }
 0x19e   : > { %740 = shalt.err (!%p737_p13)
}
 0x19f   : > { %559 = dma.vmem_to_hbm [thread:$0]  (%p881_p9), %s378_s8, 128, %s375_s9, %s356_s22  }
 0x1a0 PF: > { %s403_s4 = sand.u32 1, %s783_s12   ;;  %p1053_p5 = scmp.ge.s32.totalorder %s803_s17, 2 }
 0x1a1   : > { %s404_s7 = scalar_lea.sflag [#allocation4], %s403_s4 }
 0x1a2   : > { %p571_p12 = pnand %p1053_p5, %p888_p11 }
 0x1a4   : > { %p572_p6 = pneg %p571_p12 }
 0x1a6   : > { %774 = dma.done.wait (%p572_p6), %s404_s7, 128  }
 0x1a7   : > { %776 = vsyncadd (%p572_p6), %s404_s7, 4294967168  ;;  %s413_s11 = scalar_lea.sflag [#allocation9], %s403_s4 }
 0x1a8   : > { %778 = dma.done.wait (%p572_p6), %s413_s11, 32  }
 0x1a9   : > { %780 = vsyncadd (%p572_p6), %s413_s11, 4294967264  ;;  %s26_s17 = sadd.s32 1, %s803_s17   ;;  %s1054_s12 = smov %s787_s13 }
 0x1aa   : > { %p23_p7 = scmp.ge.s32.totalorder %s26_s17, 4   ;;  %s1055_s13 = smov %s791_s14 }
 0x1ab   : > { %s1056_s14 = smov %s886_s26  ;;  %s1057_s15 = smov %s799_s16 }
 0x1ac   : > { %s1058_s16 = smov %s1060_s20  ;;  %25 = sbr.rel (!%p23_p7) target bundleno = 10 (0xa), region = 103 }
 0x1b1   :  { %418 = vsyncpa [#allocation3], 1 }
 0x1b2   :  { %420 = vsyncpa [#allocation3 + $0x1], 1 }
 0x1b3   :  { %421 = vsyncpa [#allocation6], 1 }
 0x1b4   :  { %423 = vsyncpa [#allocation6 + $0x1], 1 }
 0x1b5   :  { %424 = vsyncpa [#allocation4], 1 }
 0x1b6   :  { %426 = vsyncpa [#allocation4 + $0x1], 1 }
 0x1b7   :  { %427 = vsyncpa [#allocation9], 1 }
 0x1b8   :  { %429 = vsyncpa [#allocation9 + $0x1], 1 }

</bundles_post_ra>
